<compile_context>
chip_gen: v5e
topology: v5e:2x2
jax: 0.10.0
libtpu: 0.0.40
codegen_flags: <defaults>
</compile_context>

<pallas_src>
import jax
import jax.numpy as jnp
from jax.experimental import pallas as pl
from jax.experimental.pallas import tpu as pltpu


def _attention_pooling_kernel(ctx_ref, bias_ref, q_ref, wkv_ref, wo_ref,
                              sel_ch_ref, sel_hc_ref, out_ref):
    BT, L, D = ctx_ref.shape
    C = wo_ref.shape[0]
    H = sel_ch_ref.shape[1]

    # ---- fused K/V projection: (BT*L, D) @ (D, 2C) on the MXU --------------
    x2 = ctx_ref[...].reshape(BT * L, D)
    kv = jnp.dot(x2, wkv_ref[...], preferred_element_type=jnp.float32)
    kv = kv.reshape(BT, L, 2 * C)
    k = kv[:, :, :C]                                   # lane-aligned slices
    v = kv[:, :, C:]

    # ---- pre-scaled, pre-projected query (hoisted to the wrapper) ----------
    q = q_ref[...].astype(jnp.float32)                 # (BT, C)

    # ---- per-head scores: VPU multiply + head-selector reduction -----------
    qk = (k * q[:, None, :]).reshape(BT * L, C)
    s = jnp.dot(qk, sel_ch_ref[...], preferred_element_type=jnp.float32)
    s = s.reshape(BT, L, H)

    # ---- masked softmax over keys (additive bias, EUP reciprocal) ----------
    s = s + bias_ref[...]                              # (BT, L, 1) bcast over H
    s = s - jnp.max(s, axis=1, keepdims=True)
    p = jnp.exp(s)
    denom = jnp.sum(p, axis=1, keepdims=True)          # (BT, 1, H)
    p = p * pl.reciprocal(denom, approx=True)          # (BT, L, H)

    # ---- expand probabilities to channels, reduce values, project out ------
    p_full = jnp.dot(p.reshape(BT * L, H), sel_hc_ref[...],
                     preferred_element_type=jnp.float32).reshape(BT, L, C)
    o = jnp.sum(p_full * v, axis=1)                    # (BT, C)

    out_ref[...] = jnp.dot(o.astype(wo_ref.dtype), wo_ref[...],
                           preferred_element_type=jnp.float32).astype(out_ref.dtype)


def attention_pooling(context, context_mask, wq, wk, wv, wo, *, head_dim,
                      block_b=None, compute_dtype=None):
    """context: (B, L, D); context_mask: (B, L) (nonzero = keep); returns (B, C).

    compute_dtype: optional (e.g. jnp.bfloat16) — weights/context are pre-cast
    on the host (halves weight HBM->VMEM traffic on v5e/v6e/v7x); f32 accumulate.
    """
    B, L, D = context.shape
    C = wq.shape[1]
    assert C % head_dim == 0
    num_heads = C // head_dim
    scale = float(head_dim) ** -0.5
    out_dtype = context.dtype

    # Hoisted query path: one (B, D) @ (D, C) XLA matmul, softmax scale folded in.
    q = (jnp.mean(context.astype(jnp.float32), axis=1)
         @ wq.astype(jnp.float32)) * scale                          # (B, C) f32

    # Additive mask bias in the consuming layout (broadcast over heads in-kernel).
    bias = jnp.where(context_mask != 0, 0.0, -1e30).astype(jnp.float32)[:, :, None]

    # Fused K/V weight; optional host-side bf16 pre-cast (all TPU generations).
    wkv = jnp.concatenate([wk, wv], axis=1)                          # (D, 2C)
    if compute_dtype is not None:
        context = context.astype(compute_dtype)
        wkv = wkv.astype(compute_dtype)
        wo = wo.astype(compute_dtype)

    # Head-selector matrices, precomputed host-side (constant index_map, fetched once).
    ch = jnp.arange(C) // head_dim
    sel_ch = (ch[:, None] == jnp.arange(num_heads)[None, :]).astype(jnp.float32)
    sel_hc = jnp.asarray(sel_ch.T)                                   # (H, C)

    # Batch blocking: target >=512 projection rows per step, keep >=2 grid steps
    # (v7x megacore) when that still gives >=128 rows per step.
    if block_b is None:
        bt = max(1, min(B, 512 // max(L, 1)))
        half = (B + 1) // 2
        if bt >= B and B > 1 and half * L >= 128:
            bt = half
        block_b = bt
    BT = max(1, min(block_b, B))
    Bp = ((B + BT - 1) // BT) * BT
    if Bp != B:
        pad = Bp - B
        context = jnp.pad(context, ((0, pad), (0, 0), (0, 0)))
        bias = jnp.pad(bias, ((0, pad), (0, 0), (0, 0)))   # 0 bias => all keys valid
        q = jnp.pad(q, ((0, pad), (0, 0)))
    grid = (Bp // BT,)

    x_item = jnp.dtype(context.dtype).itemsize
    w_item = jnp.dtype(wkv.dtype).itemsize
    o_item = jnp.dtype(out_dtype).itemsize

    # Explicit scoped-VMEM budget from the actual block footprint (with headroom).
    weight_bytes = (D * 2 * C + C * C) * w_item + 2 * C * num_heads * 4
    stream_bytes = 2 * (BT * L * D * x_item + BT * L * 4 + BT * C * 4
                        + BT * C * o_item)
    interm_bytes = BT * L * (4 * C + 3 * num_heads) * 4 + 4 * BT * C * 4
    vmem_limit = 2 * (weight_bytes + stream_bytes + interm_bytes) + (4 << 20)
    vmem_limit = int(min(max(vmem_limit, 16 << 20), 64 << 20))

    cost = pl.CostEstimate(
        flops=int(2 * Bp * L * D * 2 * C            # fused K/V projection
                  + 4 * Bp * L * C * num_heads      # selector matmuls
                  + 4 * Bp * L * C                  # qk multiply + value reduce
                  + 2 * Bp * C * C),                # output projection
        transcendentals=int(Bp * L * num_heads + Bp * num_heads),
        bytes_accessed=int(Bp * L * D * x_item + Bp * L * 4 + Bp * C * 4
                           + (D * 2 * C + C * C) * w_item + 2 * C * num_heads * 4
                           + Bp * C * o_item),
    )

    out = pl.pallas_call(
        _attention_pooling_kernel,
        out_shape=jax.ShapeDtypeStruct((Bp, C), out_dtype),
        grid=grid,
        in_specs=[
            pl.BlockSpec((BT, L, D), lambda i: (i, 0, 0)),           # context tile
            pl.BlockSpec((BT, L, 1), lambda i: (i, 0, 0)),           # mask bias tile
            pl.BlockSpec((BT, C), lambda i: (i, 0)),                 # pre-projected query
            pl.BlockSpec((D, 2 * C), lambda i: (0, 0),               # Wkv (fetched once)
                         pipeline_mode=pl.Buffered(1)),
            pl.BlockSpec((C, C), lambda i: (0, 0),                   # Wo (fetched once)
                         pipeline_mode=pl.Buffered(1)),
            pl.BlockSpec((C, num_heads), lambda i: (0, 0),           # head selector
                         pipeline_mode=pl.Buffered(1)),
            pl.BlockSpec((num_heads, C), lambda i: (0, 0),           # head selector^T
                         pipeline_mode=pl.Buffered(1)),
        ],
        out_specs=pl.BlockSpec((BT, C), lambda i: (i, 0)),
        compiler_params=pltpu.CompilerParams(
            dimension_semantics=("parallel",),
            vmem_limit_bytes=vmem_limit),
        cost_estimate=cost,
    )(context, bias, q, wkv, wo, sel_ch, sel_hc)
    return out[:B]


def attention_pooling_reference(context, context_mask, wq, wk, wv, wo, *, head_dim):
    """Pure-JAX reference of the same forward pass."""
    B, L, D = context.shape
    C = wq.shape[1]
    H = C // head_dim
    scale = head_dim ** -0.5
    m = context_mask.astype(context.dtype)

    q_in = jnp.mean(context, axis=1, keepdims=True)                     # (B, 1, D)
    q = (q_in @ wq).reshape(B, 1, H, head_dim).transpose(0, 2, 1, 3)    # (B,H,1,Hd)
    k = (context @ wk).reshape(B, L, H, head_dim).transpose(0, 2, 1, 3)
    v = (context @ wv).reshape(B, L, H, head_dim).transpose(0, 2, 1, 3)

    s = jnp.einsum("bhqd,bhkd->bhqk", q, k) * scale                      # (B,H,1,L)
    s = jnp.where((m != 0.0)[:, None, None, :], s, -jnp.finfo(jnp.float32).max)
    p = jax.nn.softmax(s, axis=-1)
    o = jnp.einsum("bhqk,bhkd->bhqd", p, v)                              # (B,H,1,Hd)
    o = o.transpose(0, 2, 1, 3).reshape(B, 1, C)
    return (o @ wo)[:, 0, :]                                             # (B, C)


if __name__ == "__main__":
    # Small, module-consistent shapes (B large enough to exercise batch blocking).
    B, L = 16, 16          # batch, context sequence length
    D = 64                 # context_dim
    C = 128                # num_channels (out_dim)
    HEAD_DIM = 64          # -> 2 heads

    key = jax.random.PRNGKey(0)
    k_ctx, k_len, k_wq, k_wk, k_wv, k_wo = jax.random.split(key, 6)

    context = jax.random.normal(k_ctx, (B, L, D), dtype=jnp.float32)
    # Deterministic valid lengths (>= 1) -> key-padding mask.
    lengths = jax.random.randint(k_len, (B,), minval=1, maxval=L + 1)
    context_mask = (jnp.arange(L)[None, :] < lengths[:, None]).astype(jnp.float32)

    wq = 0.02 * jax.random.normal(k_wq, (D, C), dtype=jnp.float32)
    wk = 0.02 * jax.random.normal(k_wk, (D, C), dtype=jnp.float32)
    wv = 0.02 * jax.random.normal(k_wv, (D, C), dtype=jnp.float32)
    wo = 0.02 * jax.random.normal(k_wo, (C, C), dtype=jnp.float32)

    ref = attention_pooling_reference(context, context_mask, wq, wk, wv, wo,
                                      head_dim=HEAD_DIM)

    # f32 path.
    out = attention_pooling(context, context_mask, wq, wk, wv, wo,
                            head_dim=HEAD_DIM)
    out = jax.block_until_ready(out)
    assert out.shape == (B, C), out.shape
    max_err = float(jnp.max(jnp.abs(out - ref)))
    assert jnp.allclose(out, ref, atol=2e-3, rtol=2e-3), f"f32 max abs err {max_err}"

    # bf16 MXU path (host-side pre-cast of weights/context; valid on v5e/v6e/v7x).
    out_bf16 = attention_pooling(context, context_mask, wq, wk, wv, wo,
                                 head_dim=HEAD_DIM, compute_dtype=jnp.bfloat16)
    out_bf16 = jax.block_until_ready(out_bf16)
    max_err_bf16 = float(jnp.max(jnp.abs(out_bf16 - ref)))
    assert jnp.allclose(out_bf16, ref, atol=3e-2, rtol=3e-2), \
        f"bf16 max abs err {max_err_bf16}"

    print("KERNEL_OK")
</pallas_src>

<mosaic_0001>
module attributes {stable_mosaic.version = 11 : i64} {
  func.func @_attention_pooling_kernel(%arg0: i32, %arg1: memref<8x16x64xf32, #tpu.memory_space<vmem>>, %arg2: memref<8x16x1xf32, #tpu.memory_space<vmem>>, %arg3: memref<8x128xf32, #tpu.memory_space<vmem>>, %arg4: memref<64x256xf32, #tpu.memory_space<vmem>>, %arg5: memref<128x128xf32, #tpu.memory_space<vmem>>, %arg6: memref<128x2xf32, #tpu.memory_space<vmem>>, %arg7: memref<2x128xf32, #tpu.memory_space<vmem>>, %arg8: memref<8x128xf32, #tpu.memory_space<vmem>>) attributes {dimension_semantics = [#tpu.dimension_semantics<parallel>], iteration_bounds = array<i64: 2>, scalar_prefetch = 0 : i64, scratch_operands = 0 : i64, tpu.core_type = #tpu.core_type<tc>, window_params = [{transform_indices = @transform_0, window_bounds = array<i64: 8, 16, 64>}, {transform_indices = @transform_1, window_bounds = array<i64: 8, 16, 1>}, {transform_indices = @transform_2, window_bounds = array<i64: 8, 128>}, {pipeline_mode = #tpu.pipeline_mode<synchronous>, transform_indices = @transform_3, window_bounds = array<i64: 64, 256>}, {pipeline_mode = #tpu.pipeline_mode<synchronous>, transform_indices = @transform_4, window_bounds = array<i64: 128, 128>}, {pipeline_mode = #tpu.pipeline_mode<synchronous>, transform_indices = @transform_5, window_bounds = array<i64: 128, 2>}, {pipeline_mode = #tpu.pipeline_mode<synchronous>, transform_indices = @transform_6, window_bounds = array<i64: 2, 128>}, {transform_indices = @transform_7, window_bounds = array<i64: 8, 128>}]} {
    %c0 = arith.constant 0 : index
    %c0_0 = arith.constant 0 : index
    %c0_1 = arith.constant 0 : index
    %0 = vector.load %arg1[%c0, %c0_0, %c0_1] : memref<8x16x64xf32, #tpu.memory_space<vmem>>, vector<8x16x64xf32>
    %1 = vector.shape_cast %0 : vector<8x16x64xf32> to vector<128x64xf32>
    %c0_2 = arith.constant 0 : index
    %c0_3 = arith.constant 0 : index
    %2 = vector.load %arg4[%c0_2, %c0_3] : memref<64x256xf32, #tpu.memory_space<vmem>>, vector<64x256xf32>
    %cst = arith.constant dense<0.000000e+00> : vector<128x256xf32>
    %3 = tpu.matmul %1, %2, %cst {dimension_numbers = #tpu.dot_dimension_numbers<[1], [0], [0], [1], [0, 0, 1, 1], [], []>} : vector<128x64xf32>, vector<64x256xf32>, vector<128x256xf32> -> vector<128x256xf32>
    %4 = vector.shape_cast %3 : vector<128x256xf32> to vector<8x16x256xf32>
    %5 = vector.extract_strided_slice %4 {offsets = [0, 0, 0], sizes = [8, 16, 128], strides = [1, 1, 1]} : vector<8x16x256xf32> to vector<8x16x128xf32>
    %6 = vector.extract_strided_slice %4 {offsets = [0, 0, 128], sizes = [8, 16, 128], strides = [1, 1, 1]} : vector<8x16x256xf32> to vector<8x16x128xf32>
    %c0_4 = arith.constant 0 : index
    %c0_5 = arith.constant 0 : index
    %7 = vector.load %arg3[%c0_4, %c0_5] : memref<8x128xf32, #tpu.memory_space<vmem>>, vector<8x128xf32>
    %8 = vector.shape_cast %7 : vector<8x128xf32> to vector<8x1x128xf32>
    %9 = vector.broadcast %8 : vector<8x1x128xf32> to vector<8x16x128xf32>
    %10 = arith.mulf %5, %9 : vector<8x16x128xf32>
    %11 = vector.shape_cast %10 : vector<8x16x128xf32> to vector<128x128xf32>
    %c0_6 = arith.constant 0 : index
    %c0_7 = arith.constant 0 : index
    %12 = vector.load %arg6[%c0_6, %c0_7] : memref<128x2xf32, #tpu.memory_space<vmem>>, vector<128x2xf32>
    %cst_8 = arith.constant dense<0.000000e+00> : vector<128x2xf32>
    %13 = tpu.matmul %11, %12, %cst_8 {dimension_numbers = #tpu.dot_dimension_numbers<[1], [0], [0], [1], [0, 0, 1, 1], [], []>} : vector<128x128xf32>, vector<128x2xf32>, vector<128x2xf32> -> vector<128x2xf32>
    %14 = vector.shape_cast %13 : vector<128x2xf32> to vector<8x16x2xf32>
    %c0_9 = arith.constant 0 : index
    %c0_10 = arith.constant 0 : index
    %c0_11 = arith.constant 0 : index
    %15 = vector.load %arg2[%c0_9, %c0_10, %c0_11] : memref<8x16x1xf32, #tpu.memory_space<vmem>>, vector<8x16x1xf32>
    %16 = vector.broadcast %15 : vector<8x16x1xf32> to vector<8x16x2xf32>
    %17 = arith.addf %14, %16 : vector<8x16x2xf32>
    %cst_12 = arith.constant dense<0xFF800000> : vector<8x2xf32>
    %18 = vector.multi_reduction <maximumf>, %17, %cst_12 [1] : vector<8x16x2xf32> to vector<8x2xf32>
    %19 = vector.shape_cast %18 : vector<8x2xf32> to vector<8x1x2xf32>
    %20 = vector.broadcast %19 : vector<8x1x2xf32> to vector<8x16x2xf32>
    %21 = arith.subf %17, %20 : vector<8x16x2xf32>
    %22 = math.exp %21 : vector<8x16x2xf32>
    %cst_13 = arith.constant dense<0.000000e+00> : vector<8x2xf32>
    %23 = vector.multi_reduction <add>, %22, %cst_13 [1] : vector<8x16x2xf32> to vector<8x2xf32>
    %24 = vector.shape_cast %23 : vector<8x2xf32> to vector<8x1x2xf32>
    %25 = tpu.reciprocal %24 {approx = true} : vector<8x1x2xf32> -> vector<8x1x2xf32>
    %26 = vector.broadcast %25 : vector<8x1x2xf32> to vector<8x16x2xf32>
    %27 = arith.mulf %22, %26 : vector<8x16x2xf32>
    %28 = vector.shape_cast %27 : vector<8x16x2xf32> to vector<128x2xf32>
    %c0_14 = arith.constant 0 : index
    %c0_15 = arith.constant 0 : index
    %29 = vector.load %arg7[%c0_14, %c0_15] : memref<2x128xf32, #tpu.memory_space<vmem>>, vector<2x128xf32>
    %cst_16 = arith.constant dense<0.000000e+00> : vector<128x128xf32>
    %30 = tpu.matmul %28, %29, %cst_16 {dimension_numbers = #tpu.dot_dimension_numbers<[1], [0], [0], [1], [0, 0, 1, 1], [], []>} : vector<128x2xf32>, vector<2x128xf32>, vector<128x128xf32> -> vector<128x128xf32>
    %31 = vector.shape_cast %30 : vector<128x128xf32> to vector<8x16x128xf32>
    %32 = arith.mulf %31, %6 : vector<8x16x128xf32>
    %cst_17 = arith.constant dense<0.000000e+00> : vector<8x128xf32>
    %33 = vector.multi_reduction <add>, %32, %cst_17 [1] : vector<8x16x128xf32> to vector<8x128xf32>
    %c0_18 = arith.constant 0 : index
    %c0_19 = arith.constant 0 : index
    %34 = vector.load %arg5[%c0_18, %c0_19] : memref<128x128xf32, #tpu.memory_space<vmem>>, vector<128x128xf32>
    %cst_20 = arith.constant dense<0.000000e+00> : vector<8x128xf32>
    %35 = tpu.matmul %33, %34, %cst_20 {dimension_numbers = #tpu.dot_dimension_numbers<[1], [0], [0], [1], [0, 0, 1, 1], [], []>} : vector<8x128xf32>, vector<128x128xf32>, vector<8x128xf32> -> vector<8x128xf32>
    %c0_21 = arith.constant 0 : index
    %c0_22 = arith.constant 0 : index
    %36 = vector.load %arg8[%c0_21, %c0_22] : memref<8x128xf32, #tpu.memory_space<vmem>>, vector<8x128xf32>
    tpu.vector_store %arg8[%c0_21, %c0_22], %35 {strides = array<i32>} : memref<8x128xf32, #tpu.memory_space<vmem>>, vector<8x128xf32>,
    return
  }
  func.func @transform_0(%arg0: i32) -> (i32, i32, i32) {
    %c0_i32 = arith.constant 0 : i32
    %c0_i32_0 = arith.constant 0 : i32
    %c0_i32_1 = arith.constant 0 : i32
    return %arg0, %c0_i32, %c0_i32_0 : i32, i32, i32
  }
  func.func @transform_1(%arg0: i32) -> (i32, i32, i32) {
    %c0_i32 = arith.constant 0 : i32
    %c0_i32_0 = arith.constant 0 : i32
    %c0_i32_1 = arith.constant 0 : i32
    return %arg0, %c0_i32, %c0_i32_0 : i32, i32, i32
  }
  func.func @transform_2(%arg0: i32) -> (i32, i32) {
    %c0_i32 = arith.constant 0 : i32
    %c0_i32_0 = arith.constant 0 : i32
    return %arg0, %c0_i32 : i32, i32
  }
  func.func @transform_3(%arg0: i32) -> (i32, i32) {
    %c0_i32 = arith.constant 0 : i32
    %c0_i32_0 = arith.constant 0 : i32
    %c0_i32_1 = arith.constant 0 : i32
    return %c0_i32, %c0_i32_0 : i32, i32
  }
  func.func @transform_4(%arg0: i32) -> (i32, i32) {
    %c0_i32 = arith.constant 0 : i32
    %c0_i32_0 = arith.constant 0 : i32
    %c0_i32_1 = arith.constant 0 : i32
    return %c0_i32, %c0_i32_0 : i32, i32
  }
  func.func @transform_5(%arg0: i32) -> (i32, i32) {
    %c0_i32 = arith.constant 0 : i32
    %c0_i32_0 = arith.constant 0 : i32
    %c0_i32_1 = arith.constant 0 : i32
    return %c0_i32, %c0_i32_0 : i32, i32
  }
  func.func @transform_6(%arg0: i32) -> (i32, i32) {
    %c0_i32 = arith.constant 0 : i32
    %c0_i32_0 = arith.constant 0 : i32
    %c0_i32_1 = arith.constant 0 : i32
    return %c0_i32, %c0_i32_0 : i32, i32
  }
  func.func @transform_7(%arg0: i32) -> (i32, i32) {
    %c0_i32 = arith.constant 0 : i32
    %c0_i32_0 = arith.constant 0 : i32
    return %arg0, %c0_i32 : i32, i32
  }
}

</mosaic_0001>

<bundles_post_ra>
// kernel: tpu_custom_call.1
= control target key start
LH: loop header
LB: loop body
LE: loop exit
PB: predicated region body
PF: predicated region fallthrough
CT: control target
= control target key end

     0   :  { %12 = vsyncpa [#allocation3], 0  ;;  %s2121_s0 = inlined_call_operand.vmem [shape: f32[16,16,64], index: 0, kind: input, shape index: {}]   ;;  %s2122_s1 = inlined_call_operand.vmem [shape: f32[16,16,1], index: 1, kind: input, shape index: {}]   ;;  %s2123_s2 = inlined_call_operand.vmem [shape: f32[16,128], index: 2, kind: input, shape index: {}]   ;;  %s2124_s3 = inlined_call_operand.vmem [shape: f32[64,256], index: 3, kind: input, shape index: {}]   ;;  %s2125_s4 = inlined_call_operand.hbm [shape: f32[128,128], index: 4, kind: input, shape index: {}]   ;;  %s2126_s5 = inlined_call_operand.vmem [shape: f32[128,2], index: 5, kind: input, shape index: {}]   ;;  %s2127_s6 = inlined_call_operand.vmem [shape: f32[2,128], index: 6, kind: input, shape index: {}]   ;;  %s2128_s7 = inlined_call_operand.hbm [shape: f32[16,128], index: 7, kind: output, shape index: {}]  }
   0x1   :  { %13 = vsyncpa [#allocation4], 0 }
   0x2   :  { %15 = vsyncpa [#allocation4 + $0x1], 0  ;;  %s1679_s24 = smov 0   ;;  %s1681_s25 = smov 0  }
   0x3   :  { %s1683_s26 = smov 0   ;;  %s1685_s27 = smov 0  }
   0x4 LB: > { %s1700_s28 = sadd.s32 4294967295, %s1633_s27   ;;  %s1364_s29 = sadd.s32 4294967294, %s1633_s27   ;;  %s1633_s27 = sphi %s1685_s27, %s2134_s27   ;;  %s1629_s26 = sphi %s1683_s26, %s2133_s26   ;;  %s1625_s25 = sphi %s1681_s25, %s2132_s25   ;;  %s1621_s24 = sphi %s1679_s24, %s2131_s24  }
   0x5   : > { %s1704_s30 = sadd.s32 1, %s1633_s27   ;;  %s190_s8 = sadd.s32 1, %s1629_s26 }
   0x6   : > { %s187_s9 = ssub.s32 %s1633_s27, %s1704_s30  ;;  %p200_p0 = scmp.ne.s32.totalorder %s1629_s26, %s1625_s25 }
   0x7   : > { %p188_p1 = scmp.eq.s32.totalorder %s187_s9, 0  ;;  %p201_p2 = scmp.eq.s32.totalorder %s1700_s28, 1 }
   0x8   : > { %p206_p3 = scmp.ne.s32.totalorder %s1625_s25, %s1621_s24  ;;  %p207_p4 = scmp.eq.s32.totalorder %s1364_s29, 1 }
   0x9   : > { %s1715_s10 = scalar_select %p188_p1, %s1629_s26, %s190_s8  }
   0xa   : > { %p1717_p5 = por %p201_p2, %p200_p0  ;;  %p1721_p6 = por %p207_p4, %p206_p3 }
   0xb   : > { %p1365_p7 = scmp.ge.s32.totalorder %s1633_s27, 1  ;;  %p214_p8 = scmp.lt.s32.totalorder %s1633_s27, 3 }
   0xc   : > { %p1447_p9 = scmp.eq.s32.totalorder %s1700_s28, 0  ;;  %s228_s15 = sshll.u32 %s2125_s4, 4  ;;  %s229_s15 = int_to_ptr.hbm [resolvable:$true] %s228_s15 }
   0xd   : > { %p215_p10 = pnand %p1365_p7, %p214_p8  ;;  %s1635_s16 = smov [#allocation2]  }
   0xe   : > { %s230_s17 = sshll.u32 %s1635_s16, 4  ;;  %s1636_s18 = smov 128   ;;  %s231_s17 = int_to_ptr.vmem [resolvable:$true] %s230_s17 }
   0xf   : > { %p1439_p11 = pneg %p215_p10  ;;  %s1637_s19 = smov 8  }
  0x10   : > { %279 = sbr.rel (%p215_p10) target bundleno = 763 (0x2fb), region = 48 }
  0x11   : > { %p1440_p12 = pnand %p1447_p9, %p1439_p11 }
  0x13   : > { %1442 = dma.hbm_to_vmem [thread:$0]  (!%p1440_p12), %s229_s15, 2048, %s231_s17, [#allocation3], %s1636_s18, %s1636_s18, %s1637_s19  }
  0x15   : > { %1612 = dma.done.wait (%p1447_p9), [#allocation3], 2048  }
  0x16   : > { %1614 = vsyncadd (%p1447_p9), [#allocation3], 4294965248  ;;  %s1738_s20 = sshll.u32 %s1700_s28, 3  ;;  %v371_v0 = vld [vmem:[%s2124_s3 + $0x70] sm:$0xff]  ;;  %v369_v1 = vld [vmem:[%s2124_s3 + $0x60] sm:$0xff]  ;;  %vm373_vm0 = vcmask 523264  }
  0x17   : > { %p324_p13 = scmp.lt.s32.totalorder %s1738_s20, 15  ;;  %430 = vmatpush.msra.mxu0 %v371_v0  ;;  %v367_v2 = vld [vmem:[%s2124_s3 + $0x50] sm:$0xff]  ;;  %v365_v3 = vld [vmem:[%s2124_s3 + $0x40] sm:$0xff]  ;;  %v608_v17 = vld [vmem:[%s2126_s5 + $0x78] sm:$0xff]  ;;  %v1638_v19 = vmov 0   ;;  %p337_p0 = scmp.lt.s32.totalorder %s1700_s28, 1 }
  0x18   : > { %v363_v4 = vld [vmem:[%s2124_s3 + $0x30] sm:$0xff]  ;;  %v361_v5 = vld [vmem:[%s2124_s3 + $0x20] sm:$0xff]  ;;  %609 = vmatpush.msra.mxu2 %v608_v17  ;;  %1486 = vset.pattern.permute.xlu0 %v1638_v19  ;;  %v606_v20 = vld [vmem:[%s2126_s5 + $0x68] sm:$0xff]  ;;  %vm786_vm1 = vcmask 15360   ;;  %vm1052_vm2 = vcmask 1041408   ;;  %vm1217_vm3 = vcmask 1041409   ;;  %s1264_s17 = scalar_lea.hbm %s2128_s7, %s1738_s20 }
  0x19   : > { %431 = vmatpush.msra.mxu0 %v369_v1  ;;  %s1751_s13 = scalar_select %p324_p13, %s1738_s20, 15  ;;  %v359_v6 = vld [vmem:[%s2124_s3 + $0x10] sm:$0xff]  ;;  %v357_v7 = vld [vmem:[%s2124_s3] sm:$0xff]  ;;  %1487 = vset.pattern.permute.xlu1 %v1638_v19  ;;  %v604_v24 = vld [vmem:[%s2126_s5 + $0x58] sm:$0xff]  ;;  %vm1219_vm4 = vcmask 1042434   ;;  %vm1221_vm5 = vcmask 1043459  }
  0x1a   : > { %v607_v18 = vld [vmem:[%s2126_s5 + $0x70] sm:$0xff]  ;;  %1488 = vset.pattern.permute.xlu2 %v1638_v19  ;;  %v605_v21 = vld [vmem:[%s2126_s5 + $0x60] sm:$0xff]  ;;  %v602_v26 = vld [vmem:[%s2126_s5 + $0x48] sm:$0xff]  ;;  %s2136_s28 = smov (!%p337_p0, %s1700_s28), 1  ;;  %vm1223_vm6 = vcmask 1044484   ;;  %vm1225_vm7 = vcmask 1045509  }
  0x1b   : > { %432 = vmatpush.msra.mxu0 %v367_v2  ;;  %s1431_s18 = sshll.u32 %s1751_s13, 4  ;;  %610 = vmatpush.msra.mxu2 %v607_v18  ;;  %v603_v25 = vld [vmem:[%s2126_s5 + $0x50] sm:$0xff]  ;;  %v601_v27 = vld [vmem:[%s2126_s5 + $0x40] sm:$0xff]  ;;  %v600_v30 = vld [vmem:[%s2126_s5 + $0x38] sm:$0xff]  ;;  %s1377_s21 = sshll.u32 %s2136_s28, 3  ;;  %vm1227_vm8 = vcmask 1046534  }
  0x1c   : > { %s1771_s9 = scalar_lea.vmem %s2121_s0, %s1431_s18  ;;  %s1841_s16 = scalar_lea.vmem %s2122_s1, %s1431_s18  ;;  %v599_v31 = vld [vmem:[%s2126_s5 + $0x30] sm:$0xff]  ;;  %v598_v32 = vld [vmem:[%s2126_s5 + $0x28] sm:$0xff]  ;;  %v597_v33 = vld [vmem:[%s2126_s5 + $0x20] sm:$0xff]  ;;  %vm1229_vm9 = vcmask 1047559  }
  0x1d   : > { %433 = vmatpush.msra.mxu0 %v365_v3  ;;  %v1777_v8 = vld [vmem:[%s1771_s9] sm:$0xff]  ;;  %v1782_v9 = vld [vmem:[%s1771_s9 + $0x8] sm:$0xff]  ;;  %v1787_v10 = vld [vmem:[%s1771_s9 + $0x10] sm:$0xff]  ;;  %611 = vmatpush.msra.mxu2 %v606_v20  ;;  %s340_s18 = scalar_lea.vmem %s2123_s2, %s1377_s21  ;;  %s320_s29 = sand.u32 1, %s1625_s25  }
  0x1e   : > { %v1792_v11 = vld [vmem:[%s1771_s9 + $0x18] sm:$0xff]  ;;  %v1797_v12 = vld [vmem:[%s1771_s9 + $0x20] sm:$0xff]  ;;  %v1802_v13 = vld [vmem:[%s1771_s9 + $0x28] sm:$0xff]  ;;  %s1370_s8 = sshll.u32 %s320_s29, 3  ;;  %s1268_s22 = sshll.u32 %s1264_s17, 4  ;;  %s1269_s22 = int_to_ptr.hbm [resolvable:$true] %s1268_s22 }
  0x1f   : > { %434 = vmatpush.msra.mxu0 %v363_v4  ;;  %v1807_v14 = vld [vmem:[%s1771_s9 + $0x30] sm:$0xff]  ;;  %v1812_v15 = vld [vmem:[%s1771_s9 + $0x38] sm:$0xff]  ;;  %v1817_v16 = vld [vmem:[%s1771_s9 + $0x40] sm:$0xff]  ;;  %612 = vmatpush.msra.mxu2 %v605_v21  ;;  %s322_s19 = scalar_lea.vmem [#allocation5], %s1370_s8  ;;  %s1254_s13 = scalar_lea.sflag [#allocation4], %s320_s29 }
  0x20   : > { %v1834_v22 = vld [vmem:[%s1771_s9 + $0x48] sm:$0xff]  ;;  %v674_v23 = vld [vmem:[%s1841_s16] sm:$0xff]  ;;  %v1859_v28 = vld [vmem:[%s1771_s9 + $0x50] sm:$0xff]  ;;  %s1266_s21 = sshll.u32 %s322_s19, 4  ;;  %s1587_s23 = scalar_lea.hbm %s2128_s7, 16  ;;  %s1267_s21 = int_to_ptr.vmem [resolvable:$true] %s1266_s21 }
  0x21   : > { %435 = vmatpush.msra.mxu0 %v361_v5  ;;  %692 = vperm.xlu0 %1486, %v674_v23   ;;  %v675_v29 = vld [vmem:[%s1841_s16 + $0x8] sm:$0xff]  ;;  %v1877_v34 = vld [vmem:[%s1771_s9 + $0x58] sm:$0xff]  ;;  %v680_v35 = vld [vmem:[%s1841_s16 + $0x30] sm:$0xff] }
  0x22   : > { %613 = vmatpush.msra.mxu2 %v604_v24  ;;  %v596_v36 = vld [vmem:[%s2126_s5 + $0x18] sm:$0xff]  ;;  %v595_v37 = vld [vmem:[%s2126_s5 + $0x10] sm:$0xff]  ;;  %v594_v38 = vld [vmem:[%s2126_s5 + $0x8] sm:$0xff] }
  0x23   : > { %436 = vmatpush.msra.mxu0 %v359_v6  ;;  %v1892_v39 = vld [vmem:[%s1771_s9 + $0x60] sm:$0xff]  ;;  %v676_v41 = vld [vmem:[%s1841_s16 + $0x10] sm:$0xff]  ;;  %v683_v42 = vld [vmem:[%s1841_s16 + $0x48] sm:$0xff] }
  0x24   : > { %614 = vmatpush.msra.mxu2 %v603_v25  ;;  %v593_v40 = vld [vmem:[%s2126_s5] sm:$0xff]  ;;  %702 = vperm.xlu1 %1487, %v676_v41   ;;  %v1902_v43 = vld [vmem:[%s1771_s9 + $0x68] sm:$0xff]  ;;  %v677_v44 = vld [vmem:[%s1841_s16 + $0x18] sm:$0xff] }
  0x25   : > { %437 = vmatpush.msra.mxu0 %v357_v7  ;;  %v686_v45 = vld [vmem:[%s1841_s16 + $0x60] sm:$0xff]  ;;  %v1910_v46 = vld [vmem:[%s1771_s9 + $0x70] sm:$0xff]  ;;  %v681_v47 = vld [vmem:[%s1841_s16 + $0x38] sm:$0xff] }
  0x26   : > { %1378 = vmatmul.msk.f32.vlgmr.msra.gmra.mxu0 %vm373_vm0, %v1777_v8  ;;  %615 = vmatpush.msra.mxu2 %v602_v26  ;;  %v689_v48 = vld [vmem:[%s1841_s16 + $0x78] sm:$0xff]  ;;  %v1923_v50 = vld [vmem:[%s340_s18] sm:$0xff]  ;;  %v684_v51 = vld [vmem:[%s1841_s16 + $0x50] sm:$0xff]  ;;  %s1581_s18 = sshra.s32 %s1269_s22, 4  ;;  %s1582_s18 = int_to_ptr.hbm [resolvable:$true] %s1581_s18 }
  0x27   : > { %v1921_v49 = vld [vmem:[%s1771_s9 + $0x78] sm:$0xff]  ;;  %v561_v52 = vperm.slane %v1923_v50, 0  ;;  %v687_v55 = vld [vmem:[%s1841_s16 + $0x68] sm:$0xff]  ;;  %v554_v58 = vrot.slane %v1923_v50, 1  ;;  %v678_v59 = vld [vmem:[%s1841_s16 + $0x20] sm:$0xff]  ;;  %v555_v2 = vrot.slane %v1923_v50, 2  ;;  %p1588_p4 = scmp.lt.s32.totalorder %s1582_s18, %s2128_s7 }
  0x28   : > { %616 = vmatpush.msra.mxu2 %v601_v27  ;;  %712 = vperm.xlu2 %1488, %v678_v59   ;;  %v679_v63 = vld [vmem:[%s1841_s16 + $0x28] sm:$0xff]  ;;  %v682_v3 = vld [vmem:[%s1841_s16 + $0x40] sm:$0xff]  ;;  %v685_v7 = vld [vmem:[%s1841_s16 + $0x58] sm:$0xff]  ;;  %v556_v19 = vrot.slane %v1923_v50, 3  ;;  %v557_v27 = vrot.slane %v1923_v50, 4  ;;  %s1583_s28 = scalar_lea.hbm %s1582_s18, 8 }
  0x29   : > { %697 = vperm.xlu0 %1486, %v675_v29   ;;  %v562_v60 = vperm.slane %v554_v58, 0  ;;  %v563_v4 = vperm.slane %v555_v2, 0  ;;  %v688_v20 = vld [vmem:[%s1841_s16 + $0x70] sm:$0xff]  ;;  %p1584_p1 = scmp.ne.s32.totalorder %s1582_s18, %s1583_s28  ;;  %p1589_p7 = scmp.lt.s32.totalorder %s1587_s23, %s1583_s28 }
  0x2a   : > { %617 = vmatpush.msra.mxu2 %v600_v30  ;;  %v564_v21 = vperm.slane %v556_v19, 0  ;;  %v565_v29 = vperm.slane %v557_v27, 0  ;;  %v370_v19 = vld [vmem:[%s2124_s3 + $0x68] sm:$0xff] }
  0x2b   : > { %p1585_p2 = pnand %p1584_p1, %p1717_p5  ;;  %p1590_p8 = por %p1589_p7, %p1588_p4 }
  0x2c   : > { %618 = vmatpush.msra.mxu2 %v599_v31  ;;  %707 = vperm.xlu1 %1487, %v677_v44  }
  0x2d   : > { %p1586_p3 = pneg %p1585_p2 }
  0x2e   : > { %1379 = vmatmul.msk.f32.gmra.mxu0 %vm373_vm0, %v1782_v9  ;;  %619 = vmatpush.msra.mxu2 %v598_v32 }
  0x2f   : > { %p1591_p9 = pnand %p1590_p8, %p1586_p3 }
  0x30   : > { %620 = vmatpush.msra.mxu2 %v597_v33  ;;  %717 = vperm.xlu2 %1488, %v679_v63  }
  0x31   : > { %722 = vperm.xlu0 %1486, %v680_v35   ;;  %v558_v35 = vrot.slane %v1923_v50, 5 }
  0x32   : > { %621 = vmatpush.msra.mxu2 %v596_v36 }
  0x33   : > { %v566_v36 = vperm.slane %v558_v35, 0 }
  0x34   : > { %622 = vmatpush.msra.mxu2 %v595_v37  ;;  %727 = vperm.xlu1 %1487, %v681_v47  }
  0x36   : > { %1380 = vmatmul.msk.f32.gmra.mxu0 %vm373_vm0, %v1787_v10  ;;  %623 = vmatpush.msra.mxu2 %v594_v38 }
  0x38   : > { %624 = vmatpush.msra.mxu2 %v593_v40  ;;  %732 = vperm.xlu2 %1488, %v682_v3  }
  0x39   : > { %737 = vperm.xlu0 %1486, %v683_v42   ;;  %v559_v42 = vrot.slane %v1923_v50, 6 }
  0x3b   : > { %v567_v44 = vperm.slane %v559_v42, 0  ;;  %v362_v42 = vld [vmem:[%s2124_s3 + $0x28] sm:$0xff] }
  0x3c   : > { %742 = vperm.xlu1 %1487, %v684_v51  }
  0x3e   : > { %1381 = vmatmul.msk.f32.gmra.mxu0 %vm373_vm0, %v1792_v11 }
  0x40   : > { %747 = vperm.xlu2 %1488, %v685_v7  }
  0x41   : > { %752 = vperm.xlu0 %1486, %v686_v45  }
  0x44   : > { %757 = vperm.xlu1 %1487, %v687_v55  }
  0x46   : > { %1382 = vmatmul.msk.f32.gmra.mxu0 %vm373_vm0, %v1797_v12 }
  0x48   : > { %762 = vperm.xlu2 %1488, %v688_v20  }
  0x49   : > { %767 = vperm.xlu0 %1486, %v689_v48  }
  0x4e   : > { %1383 = vmatmul.msk.f32.gmra.mxu0 %vm373_vm0, %v1802_v13 }
  0x56   : > { %1384 = vmatmul.msk.f32.gmra.mxu0 %vm373_vm0, %v1807_v14 }
  0x5e   : > { %1385 = vmatmul.msk.f32.gmra.mxu0 %vm373_vm0, %v1812_v15 }
  0x66   : > { %1386 = vmatmul.msk.f32.gmra.mxu0 %vm373_vm0, %v1817_v16 }
  0x6e   : > { %1387 = vmatmul.msk.f32.gmra.mxu0 %vm373_vm0, %v1834_v22 }
  0x76   : > { %1388 = vmatmul.msk.f32.gmra.mxu0 %vm373_vm0, %v1859_v28 }
  0x7e   : > { %1389 = vmatmul.msk.f32.gmra.mxu0 %vm373_vm0, %v1877_v34 }
  0x86   : > { %1390 = vmatmul.msk.f32.gmra.mxu0 %vm373_vm0, %v1892_v39 }
  0x8e   : > { %1391 = vmatmul.msk.f32.gmra.mxu0 %vm373_vm0, %v1902_v43 }
  0x93   : > { %v693_v58 = vpop.permute.xlu0 %692 }
  0x96   : > { %1392 = vmatmul.msk.f32.gmra.mxu0 %vm373_vm0, %v1910_v46  ;;  %v703_v2 = vpop.permute.xlu1 %702 }
  0x9e   : > { %1393 = vmatmul.msk.f32.gmra.mxu0 %vm373_vm0, %v1921_v49 }
  0xa3   : > { %v439_v53 = vpop.f32.mrf.mxu0 }
  0xa4   : > { %v577_v54 = vmul.f32 %v561_v52, %v439_v53 }
  0xa6   : > { %625 = vmatmul.f32.vlgmr.msra.gmra.mxu2 %v577_v54 }
  0xab   : > { %v442_v56 = vpop.f32.mrf.mxu0 }
  0xac   : > { %v578_v57 = vmul.f32 %v561_v52, %v442_v56  ;;  %v560_v52 = vrot.slane %v1923_v50, 7 }
  0xae   : > { %628 = vmatmul.f32.gmra.mxu2 %v578_v57  ;;  %v568_v53 = vperm.slane %v560_v52, 0 }
  0xb3   : > { %v445_v61 = vpop.f32.mrf.mxu0 }
  0xb4   : > { %v579_v62 = vmul.f32 %v562_v60, %v445_v61  ;;  %v698_v61 = vpop.permute.xlu0 %697 }
  0xb6   : > { %631 = vmatmul.f32.gmra.mxu2 %v579_v62 }
  0xbb   : > { %v448_v0 = vpop.f32.mrf.mxu0 }
  0xbc   : > { %v580_v1 = vmul.f32 %v562_v60, %v448_v0 }
  0xbe   : > { %634 = vmatmul.f32.gmra.mxu2 %v580_v1 }
  0xc3   : > { %v451_v5 = vpop.f32.mrf.mxu0 }
  0xc4   : > { %v581_v6 = vmul.f32 %v563_v4, %v451_v5 }
  0xc6   : > { %637 = vmatmul.f32.gmra.mxu2 %v581_v6 }
  0xcb   : > { %v454_v17 = vpop.f32.mrf.mxu0 }
  0xcc   : > { %v582_v18 = vmul.f32 %v563_v4, %v454_v17  ;;  %v372_v17 = vld [vmem:[%s2124_s3 + $0x78] sm:$0xff] }
  0xcd   : > { %495 = vmatpush.msra.mxu1 %v372_v17 }
  0xce   : > { %640 = vmatmul.f32.gmra.mxu2 %v582_v18 }
  0xcf   : > { %496 = vmatpush.msra.mxu1 %v370_v19 }
  0xd3   : > { %v457_v23 = vpop.f32.mrf.mxu0 }
  0xd4   : > { %v583_v24 = vmul.f32 %v564_v21, %v457_v23 }
  0xd6   : > { %643 = vmatmul.f32.gmra.mxu2 %v583_v24 }
  0xdb   : > { %v460_v25 = vpop.f32.mrf.mxu0 }
  0xdc   : > { %v584_v26 = vmul.f32 %v564_v21, %v460_v25  ;;  %v708_v21 = vpop.permute.xlu1 %707  ;;  %v368_v25 = vld [vmem:[%s2124_s3 + $0x58] sm:$0xff] }
  0xdd   : > { %497 = vmatpush.msra.mxu1 %v368_v25 }
  0xde   : > { %646 = vmatmul.f32.gmra.mxu2 %v584_v26 }
  0xe3   : > { %v463_v30 = vpop.f32.mrf.mxu0 }
  0xe4   : > { %v585_v31 = vmul.f32 %v565_v29, %v463_v30  ;;  %v366_v30 = vld [vmem:[%s2124_s3 + $0x48] sm:$0xff] }
  0xe5   : > { %498 = vmatpush.msra.mxu1 %v366_v30 }
  0xe6   : > { %649 = vmatmul.f32.gmra.mxu2 %v585_v31 }
  0xeb   : > { %v466_v32 = vpop.f32.mrf.mxu0 }
  0xec   : > { %v586_v33 = vmul.f32 %v565_v29, %v466_v32 }
  0xee   : > { %652 = vmatmul.f32.gmra.mxu2 %v586_v33 }
  0xf3   : > { %v469_v37 = vpop.f32.mrf.mxu0 }
  0xf4   : > { %v587_v38 = vmul.f32 %v566_v36, %v469_v37  ;;  %v364_v37 = vld [vmem:[%s2124_s3 + $0x38] sm:$0xff] }
  0xf5   : > { %499 = vmatpush.msra.mxu1 %v364_v37 }
  0xf6   : > { %655 = vmatmul.f32.gmra.mxu2 %v587_v38  ;;  %v1003_v38 = vld [vmem:[%s2127_s6] sm:$0x3] }
  0xf7   : > { %1410 = vmatpush.msk.msra.mxu3 %vm1052_vm2, %v1003_v38  ;;  %500 = vmatpush.msra.mxu1 %v362_v42 }
  0xfb   : > { %v472_v40 = vpop.f32.mrf.mxu0 }
  0xfc   : > { %v588_v41 = vmul.f32 %v566_v36, %v472_v40  ;;  %v713_v40 = vpop.permute.xlu2 %712 }
  0xfe   : > { %658 = vmatmul.f32.gmra.mxu2 %v588_v41 }
 0x103   : > { %v475_v45 = vpop.f32.mrf.mxu0 }
 0x104   : > { %v589_v47 = vmul.f32 %v567_v44, %v475_v45 }
 0x106   : > { %661 = vmatmul.f32.gmra.mxu2 %v589_v47  ;;  %v360_v47 = vld [vmem:[%s2124_s3 + $0x18] sm:$0xff] }
 0x107   : > { %501 = vmatpush.msra.mxu1 %v360_v47 }
 0x10b   : > { %v478_v48 = vpop.f32.mrf.mxu0 }
 0x10c   : > { %v590_v51 = vmul.f32 %v567_v44, %v478_v48 }
 0x10e   : > { %664 = vmatmul.f32.gmra.mxu2 %v590_v51  ;;  %v358_v51 = vld [vmem:[%s2124_s3 + $0x8] sm:$0xff] }
 0x10f   : > { %502 = vmatpush.msra.mxu1 %v358_v51 }
 0x110   : > { %1394 = vmatmul.msk.f32.vlgmr.msra.gmra.mxu1 %vm373_vm0, %v1777_v8 }
 0x113   : > { %v481_v54 = vpop.f32.mrf.mxu0 }
 0x114   : > { %v591_v55 = vmul.f32 %v568_v53, %v481_v54 }
 0x116   : > { %667 = vmatmul.f32.gmra.mxu2 %v591_v55 }
 0x118   : > { %1395 = vmatmul.msk.f32.gmra.mxu1 %vm373_vm0, %v1782_v9 }
 0x11b   : > { %v484_v56 = vpop.f32.mrf.mxu0 }
 0x11c   : > { %v592_v57 = vmul.f32 %v568_v53, %v484_v56 }
 0x11e   : > { %670 = vmatmul.f32.gmra.mxu2 %v592_v57 }
 0x120   : > { %1396 = vmatmul.msk.f32.gmra.mxu1 %vm373_vm0, %v1787_v10 }
 0x128   : > { %1397 = vmatmul.msk.f32.gmra.mxu1 %vm373_vm0, %v1792_v11 }
 0x129   : > { %v626_v59 = vpop.f32.mrf.mxu2 }
 0x12a   : > { %v770_v60 = vadd.f32 %v693_v58, %v626_v59 }
 0x12c   : > { %v787_v0 = vsel %vm786_vm1, %v770_v60, -inf }
 0x130   : > { %1398 = vmatmul.msk.f32.gmra.mxu1 %vm373_vm0, %v1797_v12 }
 0x131   : > { %v629_v62 = vpop.f32.mrf.mxu2 }
 0x132   : > { %v771_v63 = vadd.f32 %v698_v61, %v629_v62 }
 0x134   : > { %v788_v1 = vsel %vm786_vm1, %v771_v63, -inf }
 0x135   : > { %v789_v50 = vmax.f32 %v787_v0, %v788_v1 }
 0x137   : > { %v790_v3 = vrot.slane %v789_v50, 4 }
 0x138   : > { %1399 = vmatmul.msk.f32.gmra.mxu1 %vm373_vm0, %v1802_v13 }
 0x139   : > { %v791_v4 = vmax.f32 %v789_v50, %v790_v3  ;;  %v632_v5 = vpop.f32.mrf.mxu2 }
 0x13a   : > { %v772_v20 = vadd.f32 %v703_v2, %v632_v5 }
 0x13b   : > { %v792_v6 = vrot.slane %v791_v4, 2 }
 0x13c   : > { %v796_v31 = vsel %vm786_vm1, %v772_v20, -inf }
 0x13d   : > { %v793_v7 = vmax.f32 %v791_v4, %v792_v6 }
 0x13f   : > { %v794_v18 = vrot.slane %v793_v7, 1 }
 0x140   : > { %1400 = vmatmul.msk.f32.gmra.mxu1 %vm373_vm0, %v1807_v14 }
 0x141   : > { %v795_v23 = vmax.f32 %v793_v7, %v794_v18  ;;  %v635_v24 = vpop.f32.mrf.mxu2 }
 0x142   : > { %v773_v26 = vadd.f32 %v708_v21, %v635_v24 }
 0x143   : > { %v859_v27 = vsub.f32 %v770_v60, %v795_v23  ;;  %v860_v29 = vsub.f32 %v771_v63, %v795_v23  ;;  %v718_v60 = vpop.permute.xlu2 %717 }
 0x144   : > { %v797_v32 = vsel %vm786_vm1, %v773_v26, -inf }
 0x145   : > { %v875_v33 = vmul.f32 1.442695, %v859_v27  ;;  %v877_v35 = vmul.f32 1.442695, %v860_v29  ;;  %v798_v36 = vmax.f32 %v796_v31, %v797_v32  ;;  %v723_v29 = vpop.permute.xlu0 %722 }
 0x147   : > { %1489 = vpow2.f32 %v875_v33  ;;  %v799_v41 = vrot.slane %v798_v36, 4 }
 0x148   : > { %1491 = vpow2.f32 %v877_v35  ;;  %v728_v35 = vpop.permute.xlu1 %727  ;;  %1401 = vmatmul.msk.f32.gmra.mxu1 %vm373_vm0, %v1812_v15 }
 0x149   : > { %v800_v44 = vmax.f32 %v798_v36, %v799_v41  ;;  %v638_v45 = vpop.f32.mrf.mxu2 }
 0x14a   : > { %v774_v59 = vadd.f32 %v713_v40, %v638_v45 }
 0x14b   : > { %v801_v48 = vrot.slane %v800_v44, 2 }
 0x14c   : > { %v805_v8 = vsel %vm786_vm1, %v774_v59, -inf }
 0x14d   : > { %v1490_v52 = vpop.eup %1489  ;;  %v802_v53 = vmax.f32 %v800_v44, %v801_v48 }
 0x14e   : > { %v1975_v54 = vpop.eup %1491  ;;  %v907_v55 = vsel %vm786_vm1, %v1490_v52, 0.0 }
 0x14f   : > { %v908_v56 = vsel %vm786_vm1, %v1975_v54, 0.0  ;;  %v803_v57 = vrot.slane %v802_v53, 1 }
 0x150   : > { %v909_v58 = vadd.f32 %v908_v56, %v907_v55  ;;  %1402 = vmatmul.msk.f32.gmra.mxu1 %vm373_vm0, %v1817_v16 }
 0x151   : > { %v804_v61 = vmax.f32 %v802_v53, %v803_v57  ;;  %v641_v62 = vpop.f32.mrf.mxu2 }
 0x152   : > { %v910_v63 = vrot.slane %v909_v58, 4  ;;  %v775_v0 = vadd.f32 %v718_v60, %v641_v62 }
 0x153   : > { %v861_v1 = vsub.f32 %v772_v20, %v804_v61  ;;  %v862_v50 = vsub.f32 %v773_v26, %v804_v61 }
 0x154   : > { %v911_v2 = vadd.f32 %v910_v63, %v909_v58  ;;  %v806_v3 = vsel %vm786_vm1, %v775_v0, -inf }
 0x155   : > { %v879_v4 = vmul.f32 1.442695, %v861_v1  ;;  %v881_v5 = vmul.f32 1.442695, %v862_v50  ;;  %v807_v6 = vmax.f32 %v805_v8, %v806_v3 }
 0x156   : > { %v912_v7 = vrot.slane %v911_v2, 2 }
 0x157   : > { %1493 = vpow2.f32 %v879_v4  ;;  %v808_v17 = vrot.slane %v807_v6, 4 }
 0x158   : > { %1495 = vpow2.f32 %v881_v5  ;;  %v913_v18 = vadd.f32 %v912_v7, %v911_v2  ;;  %v733_v2 = vpop.permute.xlu2 %732  ;;  %1403 = vmatmul.msk.f32.gmra.mxu1 %vm373_vm0, %v1834_v22 }
 0x159   : > { %v809_v19 = vmax.f32 %v807_v6, %v808_v17  ;;  %v644_v21 = vpop.f32.mrf.mxu2  ;;  %v738_v6 = vpop.permute.xlu0 %737 }
 0x15a   : > { %v914_v20 = vrot.slane %v913_v18, 1  ;;  %v776_v33 = vadd.f32 %v723_v29, %v644_v21 }
 0x15b   : > { %v810_v23 = vrot.slane %v809_v19, 2 }
 0x15c   : > { %v915_v24 = vadd.f32 %v914_v20, %v913_v18  ;;  %v814_v45 = vsel %vm786_vm1, %v776_v33, -inf }
 0x15d   : > { %v1984_v25 = vpop.eup %1493  ;;  %v811_v26 = vmax.f32 %v809_v19, %v810_v23 }
 0x15e   : > { %v1988_v27 = vpop.eup %1495  ;;  %v916_v9 = vsel %vm786_vm1, %v1984_v25, 0.0  ;;  %1497 = vrcp.f32 %v915_v24 }
 0x15f   : > { %v917_v30 = vsel %vm786_vm1, %v1988_v27, 0.0  ;;  %v812_v31 = vrot.slane %v811_v26, 1 }
 0x160   : > { %v918_v32 = vadd.f32 %v917_v30, %v916_v9  ;;  %1404 = vmatmul.msk.f32.gmra.mxu1 %vm373_vm0, %v1859_v28 }
 0x161   : > { %v813_v36 = vmax.f32 %v811_v26, %v812_v31  ;;  %v647_v37 = vpop.f32.mrf.mxu2 }
 0x162   : > { %v919_v38 = vrot.slane %v918_v32, 4  ;;  %v777_v40 = vadd.f32 %v728_v35, %v647_v37 }
 0x163   : > { %v863_v41 = vsub.f32 %v774_v59, %v813_v36  ;;  %v864_v10 = vsub.f32 %v775_v0, %v813_v36 }
 0x164   : > { %v1498_v42 = vpop.eup %1497  ;;  %v920_v44 = vadd.f32 %v919_v38, %v918_v32  ;;  %v815_v47 = vsel %vm786_vm1, %v777_v40, -inf }
 0x165   : > { %v883_v48 = vmul.f32 1.442695, %v863_v41  ;;  %v885_v51 = vmul.f32 1.442695, %v864_v10  ;;  %v816_v53 = vmax.f32 %v814_v45, %v815_v47  ;;  %v987_v55 = vmul.f32 %v1498_v42, %v1490_v52 }
 0x166   : > { %v921_v56 = vrot.slane %v920_v44, 2  ;;  %v988_v52 = vmul.f32 %v1498_v42, %v1975_v54 }
 0x167   : > { %1499 = vpow2.f32 %v883_v48  ;;  %v817_v57 = vrot.slane %v816_v53, 4  ;;  %1411 = vmatmul.msk.f32.vlgmr.msra.gmra.mxu3 %vm786_vm1, %v987_v55 }
 0x168   : > { %1501 = vpow2.f32 %v885_v51  ;;  %v922_v58 = vadd.f32 %v921_v56, %v920_v44  ;;  %v743_v44 = vpop.permute.xlu1 %742  ;;  %1405 = vmatmul.msk.f32.gmra.mxu1 %vm373_vm0, %v1877_v34 }
 0x169   : > { %v818_v59 = vmax.f32 %v816_v53, %v817_v57  ;;  %v650_v60 = vpop.f32.mrf.mxu2  ;;  %v748_v53 = vpop.permute.xlu2 %747 }
 0x16a   : > { %v923_v61 = vrot.slane %v922_v58, 1  ;;  %v778_v5 = vadd.f32 %v733_v2, %v650_v60 }
 0x16b   : > { %v819_v62 = vrot.slane %v818_v59, 2 }
 0x16c   : > { %v924_v63 = vadd.f32 %v923_v61, %v922_v58  ;;  %v823_v23 = vsel %vm786_vm1, %v778_v5, -inf }
 0x16d   : > { %v1999_v0 = vpop.eup %1499  ;;  %v820_v1 = vmax.f32 %v818_v59, %v819_v62 }
 0x16e   : > { %v2004_v11 = vpop.eup %1501  ;;  %v925_v50 = vsel %vm786_vm1, %v1999_v0, 0.0  ;;  %1503 = vrcp.f32 %v924_v63 }
 0x16f   : > { %v926_v8 = vsel %vm786_vm1, %v2004_v11, 0.0  ;;  %v821_v3 = vrot.slane %v820_v1, 1  ;;  %1412 = vmatmul.msk.f32.gmra.mxu3 %vm786_vm1, %v988_v52 }
 0x170   : > { %v927_v4 = vadd.f32 %v926_v8, %v925_v50  ;;  %1406 = vmatmul.msk.f32.gmra.mxu1 %vm373_vm0, %v1892_v39 }
 0x171   : > { %v822_v54 = vmax.f32 %v820_v1, %v821_v3  ;;  %v653_v7 = vpop.f32.mrf.mxu2 }
 0x172   : > { %v928_v17 = vrot.slane %v927_v4, 4  ;;  %v779_v12 = vadd.f32 %v738_v6, %v653_v7 }
 0x173   : > { %v865_v18 = vsub.f32 %v776_v33, %v822_v54  ;;  %v866_v19 = vsub.f32 %v777_v40, %v822_v54 }
 0x174   : > { %v1504_v21 = vpop.eup %1503  ;;  %v929_v20 = vadd.f32 %v928_v17, %v927_v4  ;;  %v824_v24 = vsel %vm786_vm1, %v779_v12, -inf }
 0x175   : > { %v887_v26 = vmul.f32 1.442695, %v865_v18  ;;  %v889_v9 = vmul.f32 1.442695, %v866_v19  ;;  %v825_v29 = vmax.f32 %v823_v23, %v824_v24  ;;  %v989_v30 = vmul.f32 %v1504_v21, %v1984_v25  ;;  %v753_v19 = vpop.permute.xlu0 %752 }
 0x176   : > { %v930_v31 = vrot.slane %v929_v20, 2  ;;  %v990_v25 = vmul.f32 %v1504_v21, %v1988_v27 }
 0x177   : > { %1505 = vpow2.f32 %v887_v26  ;;  %v826_v32 = vrot.slane %v825_v29, 4  ;;  %1413 = vmatmul.msk.f32.gmra.mxu3 %vm786_vm1, %v989_v30  ;;  %v758_v26 = vpop.permute.xlu1 %757 }
 0x178   : > { %1507 = vpow2.f32 %v889_v9  ;;  %v931_v33 = vadd.f32 %v930_v31, %v929_v20  ;;  %1407 = vmatmul.msk.f32.gmra.mxu1 %vm373_vm0, %v1902_v43 }
 0x179   : > { %v827_v35 = vmax.f32 %v825_v29, %v826_v32  ;;  %v656_v36 = vpop.f32.mrf.mxu2 }
 0x17a   : > { %v932_v37 = vrot.slane %v931_v33, 1  ;;  %v780_v51 = vadd.f32 %v743_v44, %v656_v36 }
 0x17b   : > { %v828_v38 = vrot.slane %v827_v35, 2 }
 0x17c   : > { %v933_v40 = vadd.f32 %v932_v37, %v931_v33  ;;  %v832_v61 = vsel %vm786_vm1, %v780_v51, -inf }
 0x17d   : > { %v2017_v41 = vpop.eup %1505  ;;  %v829_v10 = vmax.f32 %v827_v35, %v828_v38 }
 0x17e   : > { %v2022_v13 = vpop.eup %1507  ;;  %v934_v42 = vsel %vm786_vm1, %v2017_v41, 0.0  ;;  %1509 = vrcp.f32 %v933_v40 }
 0x17f   : > { %v935_v45 = vsel %vm786_vm1, %v2022_v13, 0.0  ;;  %v830_v47 = vrot.slane %v829_v10, 1  ;;  %1414 = vmatmul.msk.f32.gmra.mxu3 %vm786_vm1, %v990_v25 }
 0x180   : > { %v936_v48 = vadd.f32 %v935_v45, %v934_v42  ;;  %1408 = vmatmul.msk.f32.gmra.mxu1 %vm373_vm0, %v1910_v46 }
 0x181   : > { %v831_v27 = vmax.f32 %v829_v10, %v830_v47  ;;  %v659_v55 = vpop.f32.mrf.mxu2 }
 0x182   : > { %v937_v56 = vrot.slane %v936_v48, 4  ;;  %v781_v14 = vadd.f32 %v748_v53, %v659_v55 }
 0x183   : > { %v867_v57 = vsub.f32 %v778_v5, %v831_v27  ;;  %v868_v58 = vsub.f32 %v779_v12, %v831_v27 }
 0x184   : > { %v1510_v59 = vpop.eup %1509  ;;  %v938_v60 = vadd.f32 %v937_v56, %v936_v48  ;;  %v833_v62 = vsel %vm786_vm1, %v781_v14, -inf }
 0x185   : > { %v891_v63 = vmul.f32 1.442695, %v867_v57  ;;  %v893_v1 = vmul.f32 1.442695, %v868_v58  ;;  %v834_v52 = vmax.f32 %v832_v61, %v833_v62  ;;  %v991_v50 = vmul.f32 %v1510_v59, %v1999_v0  ;;  %v768_v61 = vpop.permute.xlu0 %767 }
 0x186   : > { %v939_v2 = vrot.slane %v938_v60, 2  ;;  %v992_v0 = vmul.f32 %v1510_v59, %v2004_v11 }
 0x187   : > { %1511 = vpow2.f32 %v891_v63  ;;  %v835_v8 = vrot.slane %v834_v52, 4  ;;  %1415 = vmatmul.msk.f32.gmra.mxu3 %vm786_vm1, %v991_v50 }
 0x188   : > { %1513 = vpow2.f32 %v893_v1  ;;  %v940_v3 = vadd.f32 %v939_v2, %v938_v60  ;;  %1409 = vmatmul.msk.f32.gmra.mxu1 %vm373_vm0, %v1921_v49  ;;  %v1208_v49 = vld [vmem:[#allocation2 + $0x78] sm:$0xff] }
 0x189   : > { %v836_v4 = vmax.f32 %v834_v52, %v835_v8  ;;  %v662_v5 = vpop.f32.mrf.mxu2  ;;  %1232 = vmatpush.msrb.mxu3 %v1208_v49 }
 0x18a   : > { %v941_v6 = vrot.slane %v940_v3, 1  ;;  %v782_v24 = vadd.f32 %v753_v19, %v662_v5 }
 0x18b   : > { %v837_v54 = vrot.slane %v836_v4, 2 }
 0x18c   : > { %v942_v7 = vadd.f32 %v941_v6, %v940_v3  ;;  %v841_v35 = vsel %vm786_vm1, %v782_v24, -inf }
 0x18d   : > { %v2035_v17 = vpop.eup %1511  ;;  %v838_v12 = vmax.f32 %v836_v4, %v837_v54 }
 0x18e   : > { %v2040_v15 = vpop.eup %1513  ;;  %v943_v18 = vsel %vm786_vm1, %v2035_v17, 0.0  ;;  %1515 = vrcp.f32 %v942_v7 }
 0x18f   : > { %v944_v21 = vsel %vm786_vm1, %v2040_v15, 0.0  ;;  %v839_v20 = vrot.slane %v838_v12, 1  ;;  %1416 = vmatmul.msk.f32.gmra.mxu3 %vm786_vm1, %v992_v0 }
 0x190   : > { %v945_v23 = vadd.f32 %v944_v21, %v943_v18 }
 0x191   : > { %v840_v11 = vmax.f32 %v838_v12, %v839_v20  ;;  %v665_v9 = vpop.f32.mrf.mxu2 }
 0x192   : > { %v946_v29 = vrot.slane %v945_v23, 4  ;;  %v783_v16 = vadd.f32 %v758_v26, %v665_v9 }
 0x193   : > { %v869_v30 = vsub.f32 %v780_v51, %v840_v11  ;;  %v870_v31 = vsub.f32 %v781_v14, %v840_v11  ;;  %v763_v14 = vpop.permute.xlu2 %762 }
 0x194   : > { %v1516_v32 = vpop.eup %1515  ;;  %v947_v33 = vadd.f32 %v946_v29, %v945_v23  ;;  %v842_v36 = vsel %vm786_vm1, %v783_v16, -inf }
 0x195   : > { %v895_v37 = vmul.f32 1.442695, %v869_v30  ;;  %v897_v38 = vmul.f32 1.442695, %v870_v31  ;;  %v843_v40 = vmax.f32 %v841_v35, %v842_v36  ;;  %v993_v10 = vmul.f32 %v1516_v32, %v2017_v41 }
 0x196   : > { %v948_v25 = vrot.slane %v947_v33, 2  ;;  %v994_v56 = vmul.f32 %v1516_v32, %v2022_v13 }
 0x197   : > { %1517 = vpow2.f32 %v895_v37  ;;  %v844_v42 = vrot.slane %v843_v40, 4  ;;  %1417 = vmatmul.msk.f32.gmra.mxu3 %vm786_vm1, %v993_v10 }
 0x198   : > { %1519 = vpow2.f32 %v897_v38  ;;  %v949_v44 = vadd.f32 %v948_v25, %v947_v33 }
 0x199   : > { %v845_v45 = vmax.f32 %v843_v40, %v844_v42  ;;  %v668_v47 = vpop.f32.mrf.mxu2 }
 0x19a   : > { %v950_v48 = vrot.slane %v949_v44, 1  ;;  %v784_v60 = vadd.f32 %v763_v14, %v668_v47 }
 0x19b   : > { %v846_v51 = vrot.slane %v845_v45, 2 }
 0x19c   : > { %v951_v53 = vadd.f32 %v950_v48, %v949_v44  ;;  %v850_v8 = vsel %vm786_vm1, %v784_v60, -inf }
 0x19d   : > { %v1518_v27 = vpop.eup %1517  ;;  %v847_v55 = vmax.f32 %v845_v45, %v846_v51 }
 0x19e   : > { %v2056_v22 = vpop.eup %1519  ;;  %v952_v41 = vsel %vm786_vm1, %v1518_v27, 0.0  ;;  %1521 = vrcp.f32 %v951_v53 }
 0x19f   : > { %v953_v57 = vsel %vm786_vm1, %v2056_v22, 0.0  ;;  %v848_v58 = vrot.slane %v847_v55, 1  ;;  %1418 = vmatmul.msk.f32.gmra.mxu3 %vm786_vm1, %v994_v56 }
 0x1a0   : > { %v954_v59 = vadd.f32 %v953_v57, %v952_v41 }
 0x1a1   : > { %v849_v62 = vmax.f32 %v847_v55, %v848_v58  ;;  %v671_v13 = vpop.f32.mrf.mxu2 }
 0x1a2   : > { %v955_v63 = vrot.slane %v954_v59, 4  ;;  %v785_v1 = vadd.f32 %v768_v61, %v671_v13 }
 0x1a3   : > { %v871_v28 = vsub.f32 %v782_v24, %v849_v62  ;;  %v872_v52 = vsub.f32 %v783_v16, %v849_v62  ;;  %v1207_v62 = vld [vmem:[#allocation2 + $0x70] sm:$0xff] }
 0x1a4   : > { %v1522_v50 = vpop.eup %1521  ;;  %v956_v2 = vadd.f32 %v955_v63, %v954_v59  ;;  %v851_v3 = vsel %vm786_vm1, %v785_v1, -inf  ;;  %1233 = vmatpush.msrb.mxu3 %v1207_v62  ;;  %v1198_v62 = vld [vmem:[#allocation2 + $0x28] sm:$0xff] }
 0x1a5   : > { %v899_v4 = vmul.f32 1.442695, %v871_v28  ;;  %v901_v5 = vmul.f32 1.442695, %v872_v52  ;;  %v852_v6 = vmax.f32 %v850_v8, %v851_v3  ;;  %v995_v54 = vmul.f32 %v1522_v50, %v2035_v17  ;;  %v1205_v8 = vld [vmem:[#allocation2 + $0x60] sm:$0xff] }
 0x1a6   : > { %v957_v7 = vrot.slane %v956_v2, 2  ;;  %v996_v26 = vmul.f32 %v1522_v50, %v2040_v15 }
 0x1a7   : > { %1523 = vpow2.f32 %v899_v4  ;;  %v853_v12 = vrot.slane %v852_v6, 4  ;;  %1419 = vmatmul.msk.f32.gmra.mxu3 %vm786_vm1, %v995_v54 }
 0x1a8   : > { %1525 = vpow2.f32 %v901_v5  ;;  %v958_v0 = vadd.f32 %v957_v7, %v956_v2  ;;  %v1206_v2 = vld [vmem:[#allocation2 + $0x68] sm:$0xff] }
 0x1a9   : > { %v854_v18 = vmax.f32 %v852_v6, %v853_v12  ;;  %1234 = vmatpush.msrb.mxu3 %v1206_v2  ;;  %v1204_v12 = vld [vmem:[#allocation2 + $0x58] sm:$0xff]  ;;  %v1195_v2 = vld [vmem:[#allocation2 + $0x10] sm:$0xff] }
 0x1aa   : > { %v959_v19 = vrot.slane %v958_v0, 1 }
 0x1ab   : > { %v855_v21 = vrot.slane %v854_v18, 2  ;;  %1235 = vmatpush.msrb.mxu3 %v1205_v8 }
 0x1ac   : > { %v960_v20 = vadd.f32 %v959_v19, %v958_v0  ;;  %v1203_v0 = vld [vmem:[#allocation2 + $0x50] sm:$0xff] }
 0x1ad   : > { %v1524_v23 = vpop.eup %1523  ;;  %v856_v24 = vmax.f32 %v854_v18, %v855_v21  ;;  %1236 = vmatpush.msrb.mxu3 %v1204_v12 }
 0x1ae   : > { %v1526_v17 = vpop.eup %1525  ;;  %v961_v34 = vsel %vm786_vm1, %v1524_v23, 0.0  ;;  %1527 = vrcp.f32 %v960_v20 }
 0x1af   : > { %v962_v11 = vsel %vm786_vm1, %v1526_v17, 0.0  ;;  %v857_v9 = vrot.slane %v856_v24, 1  ;;  %1420 = vmatmul.msk.f32.gmra.mxu3 %vm786_vm1, %v996_v26 }
 0x1b0   : > { %v963_v29 = vadd.f32 %v962_v11, %v961_v34  ;;  %1237 = vmatpush.msrb.mxu3 %v1203_v0 }
 0x1b1   : > { %v858_v16 = vmax.f32 %v856_v24, %v857_v9 }
 0x1b2   : > { %v964_v30 = vrot.slane %v963_v29, 4 }
 0x1b3   : > { %v873_v31 = vsub.f32 %v784_v60, %v858_v16  ;;  %v874_v32 = vsub.f32 %v785_v1, %v858_v16 }
 0x1b4   : > { %v1528_v33 = vpop.eup %1527  ;;  %v965_v35 = vadd.f32 %v964_v30, %v963_v29 }
 0x1b5   : > { %v903_v15 = vmul.f32 1.442695, %v873_v31  ;;  %v905_v36 = vmul.f32 1.442695, %v874_v32  ;;  %v997_v37 = vmul.f32 %v1528_v33, %v1518_v27  ;;  %v998_v42 = vmul.f32 %v1528_v33, %v2056_v22  ;;  %v504_v22 = vpop.f32.mrf.mxu1 }
 0x1b6   : > { %v966_v39 = vrot.slane %v965_v35, 2 }
 0x1b7   : > { %1529 = vpow2.f32 %v903_v15  ;;  %1421 = vmatmul.msk.f32.gmra.mxu3 %vm786_vm1, %v997_v37  ;;  %v1201_v15 = vld [vmem:[#allocation2 + $0x40] sm:$0xff] }
 0x1b8   : > { %1531 = vpow2.f32 %v905_v36  ;;  %v967_v38 = vadd.f32 %v966_v39, %v965_v35  ;;  %v1202_v35 = vld [vmem:[#allocation2 + $0x48] sm:$0xff] }
 0x1b9   : > { %1238 = vmatpush.msrb.mxu3 %v1202_v35 }
 0x1ba   : > { %v968_v40 = vrot.slane %v967_v38, 1 }
 0x1bb   : > { %1239 = vmatpush.msrb.mxu3 %v1201_v15 }
 0x1bc   : > { %v969_v10 = vadd.f32 %v968_v40, %v967_v38 }
 0x1bd   : > { %v1530_v25 = vpop.eup %1529  ;;  %v507_v58 = vpop.f32.mrf.mxu1 }
 0x1be   : > { %v1532_v44 = vpop.eup %1531  ;;  %v970_v45 = vsel %vm786_vm1, %v1530_v25, 0.0  ;;  %1533 = vrcp.f32 %v969_v10 }
 0x1bf   : > { %v971_v43 = vsel %vm786_vm1, %v1532_v44, 0.0  ;;  %1422 = vmatmul.msk.f32.gmra.mxu3 %vm786_vm1, %v998_v42 }
 0x1c0   : > { %v972_v47 = vadd.f32 %v971_v43, %v970_v45 }
 0x1c2   : > { %v973_v48 = vrot.slane %v972_v47, 4 }
 0x1c4   : > { %v1534_v51 = vpop.eup %1533  ;;  %v974_v53 = vadd.f32 %v973_v48, %v972_v47 }
 0x1c5   : > { %v999_v27 = vmul.f32 %v1534_v51, %v1524_v23  ;;  %v1000_v14 = vmul.f32 %v1534_v51, %v1526_v17  ;;  %v510_v61 = vpop.f32.mrf.mxu1  ;;  %v1200_v51 = vld [vmem:[#allocation2 + $0x38] sm:$0xff] }
 0x1c6   : > { %v975_v55 = vrot.slane %v974_v53, 2  ;;  %1240 = vmatpush.msrb.mxu3 %v1200_v51 }
 0x1c7   : > { %1423 = vmatmul.msk.f32.gmra.mxu3 %vm786_vm1, %v999_v27 }
 0x1c8   : > { %v976_v46 = vadd.f32 %v975_v55, %v974_v53  ;;  %v1199_v53 = vld [vmem:[#allocation2 + $0x30] sm:$0xff] }
 0x1c9   : > { %1241 = vmatpush.msrb.mxu3 %v1199_v53 }
 0x1ca   : > { %v977_v56 = vrot.slane %v976_v46, 1 }
 0x1cb   : > { %1242 = vmatpush.msrb.mxu3 %v1198_v62 }
 0x1cc   : > { %v978_v41 = vadd.f32 %v977_v56, %v976_v46 }
 0x1cd   : > { %v513_v13 = vpop.f32.mrf.mxu1 }
 0x1ce   : > { %1535 = vrcp.f32 %v978_v41 }
 0x1cf   : > { %1424 = vmatmul.msk.f32.gmra.mxu3 %vm786_vm1, %v1000_v14 }
 0x1d4   : > { %v1536_v57 = vpop.eup %1535 }
 0x1d5   : > { %v1001_v59 = vmul.f32 %v1536_v57, %v1530_v25  ;;  %v1002_v60 = vmul.f32 %v1536_v57, %v1532_v44  ;;  %v516_v52 = vpop.f32.mrf.mxu1 }
 0x1d7   : > { %1425 = vmatmul.msk.f32.gmra.mxu3 %vm786_vm1, %v1001_v59 }
 0x1dd   : > { %v519_v6 = vpop.f32.mrf.mxu1 }
 0x1df   : > { %1426 = vmatmul.msk.f32.gmra.mxu3 %vm786_vm1, %v1002_v60 }
 0x1e5   : > { %v522_v23 = vpop.f32.mrf.mxu1 }
 0x1ea   : > { %v1073_v63 = vpop.f32.mrf.mxu3 }
 0x1eb   : > { %v1121_v1 = vmul.f32 %v1073_v63, %v504_v22 }
 0x1ed   : > { %v525_v31 = vpop.f32.mrf.mxu1 }
 0x1f2   : > { %v1076_v28 = vpop.f32.mrf.mxu3 }
 0x1f3   : > { %v1122_v50 = vmul.f32 %v1076_v28, %v507_v58 }
 0x1f5   : > { %v1137_v3 = vadd.f32 %v1122_v50, %v1121_v1  ;;  %v528_v42 = vpop.f32.mrf.mxu1  ;;  %v1196_v50 = vld [vmem:[#allocation2 + $0x18] sm:$0xff] }
 0x1f7   : > { %v1138_v54 = vrot.slane %v1137_v3, 4 }
 0x1f9   : > { %v1139_v7 = vadd.f32 %v1138_v54, %v1137_v3  ;;  %v1193_v54 = vld [vmem:[#allocation2] sm:$0xff] }
 0x1fa   : > { %v1079_v4 = vpop.f32.mrf.mxu3 }
 0x1fb   : > { %v1123_v5 = vmul.f32 %v1079_v4, %v510_v61  ;;  %v1140_v21 = vrot.slane %v1139_v7, 2 }
 0x1fd   : > { %v1141_v26 = vadd.f32 %v1140_v21, %v1139_v7  ;;  %v531_v56 = vpop.f32.mrf.mxu1 }
 0x1ff   : > { %v1142_v29 = vrot.slane %v1141_v26, 1 }
 0x201   : > { %v1143_v32 = vadd.f32 %v1142_v29, %v1141_v26 }
 0x202   : > { %v1082_v18 = vpop.f32.mrf.mxu3 }
 0x203   : > { %v1124_v19 = vmul.f32 %v1082_v18, %v513_v13  ;;  %v1197_v13 = vld [vmem:[#allocation2 + $0x20] sm:$0xff] }
 0x204   : > { %1243 = vmatpush.msrb.mxu3 %v1197_v13 }
 0x205   : > { %v1144_v20 = vadd.f32 %v1124_v19, %v1123_v5  ;;  %v534_v60 = vpop.f32.mrf.mxu1 }
 0x206   : > { %1244 = vmatpush.msrb.mxu3 %v1196_v50 }
 0x207   : > { %v1145_v24 = vrot.slane %v1144_v20, 4 }
 0x208   : > { %1245 = vmatpush.msrb.mxu3 %v1195_v2 }
 0x209   : > { %v1146_v17 = vadd.f32 %v1145_v24, %v1144_v20 }
 0x20a   : > { %v1085_v34 = vpop.f32.mrf.mxu3 }
 0x20b   : > { %v1147_v11 = vrot.slane %v1146_v17, 2  ;;  %v1125_v9 = vmul.f32 %v1085_v34, %v516_v52 }
 0x20d   : > { %v1148_v16 = vadd.f32 %v1147_v11, %v1146_v17  ;;  %v537_v28 = vpop.f32.mrf.mxu1 }
 0x20f   : > { %v1149_v30 = vrot.slane %v1148_v16, 1 }
 0x211   : > { %v1150_v33 = vadd.f32 %v1149_v30, %v1148_v16 }
 0x212   : > { %v1088_v36 = vpop.f32.mrf.mxu3 }
 0x213   : > { %v1218_v37 = vsel %vm1217_vm3, %v1150_v33, %v1143_v32  ;;  %v1126_v39 = vmul.f32 %v1088_v36, %v519_v6  ;;  %v1194_v6 = vld [vmem:[#allocation2 + $0x8] sm:$0xff] }
 0x214   : > { %1246 = vmatpush.msrb.mxu3 %v1194_v6 }
 0x215   : > { %v1151_v38 = vadd.f32 %v1126_v39, %v1125_v9  ;;  %v540_v3 = vpop.f32.mrf.mxu1 }
 0x216   : > { %1247 = vmatpush.msrb.mxu3 %v1193_v54 }
 0x217   : > { %v1152_v40 = vrot.slane %v1151_v38, 4 }
 0x219   : > { %v1153_v10 = vadd.f32 %v1152_v40, %v1151_v38 }
 0x21a   : > { %v1091_v25 = vpop.f32.mrf.mxu3 }
 0x21b   : > { %v1154_v44 = vrot.slane %v1153_v10, 2  ;;  %v1127_v45 = vmul.f32 %v1091_v25, %v522_v23 }
 0x21d   : > { %v1155_v43 = vadd.f32 %v1154_v44, %v1153_v10  ;;  %v543_v5 = vpop.f32.mrf.mxu1 }
 0x21f   : > { %v1156_v47 = vrot.slane %v1155_v43, 1 }
 0x221   : > { %v1157_v48 = vadd.f32 %v1156_v47, %v1155_v43 }
 0x222   : > { %v1094_v27 = vpop.f32.mrf.mxu3 }
 0x223   : > { %v1128_v55 = vmul.f32 %v1094_v27, %v525_v31  ;;  %v1220_v46 = vsel %vm1219_vm4, %v1157_v48, %v1218_v37 }
 0x225   : > { %v1158_v22 = vadd.f32 %v1128_v55, %v1127_v45  ;;  %v546_v17 = vpop.f32.mrf.mxu1 }
 0x227   : > { %v1159_v41 = vrot.slane %v1158_v22, 4 }
 0x229   : > { %v1160_v14 = vadd.f32 %v1159_v41, %v1158_v22 }
 0x22a   : > { %v1097_v57 = vpop.f32.mrf.mxu3 }
 0x22b   : > { %v1161_v58 = vrot.slane %v1160_v14, 2  ;;  %v1129_v0 = vmul.f32 %v1097_v57, %v528_v42 }
 0x22d   : > { %v1162_v59 = vadd.f32 %v1161_v58, %v1160_v14  ;;  %v549_v33 = vpop.f32.mrf.mxu1 }
 0x22f   : > { %v1163_v61 = vrot.slane %v1162_v59, 1 }
 0x231   : > { %v1164_v49 = vadd.f32 %v1163_v61, %v1162_v59 }
 0x232   : > { %v1100_v63 = vpop.f32.mrf.mxu3 }
 0x233   : > { %v1222_v1 = vsel %vm1221_vm5, %v1164_v49, %v1220_v46  ;;  %v1130_v7 = vmul.f32 %v1100_v63, %v531_v56 }
 0x235   : > { %v1165_v20 = vadd.f32 %v1130_v7, %v1129_v0 }
 0x237   : > { %v1166_v34 = vrot.slane %v1165_v20, 4 }
 0x239   : > { %v1167_v16 = vadd.f32 %v1166_v34, %v1165_v20 }
 0x23a   : > { %v1103_v52 = vpop.f32.mrf.mxu3 }
 0x23b   : > { %v1131_v19 = vmul.f32 %v1103_v52, %v534_v60  ;;  %v1168_v32 = vrot.slane %v1167_v16, 2 }
 0x23d   : > { %v1169_v38 = vadd.f32 %v1168_v32, %v1167_v16 }
 0x23f   : > { %v1170_v44 = vrot.slane %v1169_v38, 1 }
 0x241   : > { %v1171_v51 = vadd.f32 %v1170_v44, %v1169_v38 }
 0x242   : > { %v1106_v8 = vpop.f32.mrf.mxu3 }
 0x243   : > { %v1132_v12 = vmul.f32 %v1106_v8, %v537_v28  ;;  %v1224_v56 = vsel %vm1223_vm6, %v1171_v51, %v1222_v1 }
 0x245   : > { %v1172_v24 = vadd.f32 %v1132_v12, %v1131_v19 }
 0x247   : > { %v1173_v11 = vrot.slane %v1172_v24, 4 }
 0x249   : > { %v1174_v30 = vadd.f32 %v1173_v11, %v1172_v24 }
 0x24a   : > { %v1109_v4 = vpop.f32.mrf.mxu3 }
 0x24b   : > { %v1133_v23 = vmul.f32 %v1109_v4, %v540_v3  ;;  %v1175_v35 = vrot.slane %v1174_v30, 2 }
 0x24d   : > { %v1176_v40 = vadd.f32 %v1175_v35, %v1174_v30 }
 0x24f   : > { %v1177_v45 = vrot.slane %v1176_v40, 1 }
 0x251   : > { %v1178_v53 = vadd.f32 %v1177_v45, %v1176_v40 }
 0x252   : > { %v1112_v18 = vpop.f32.mrf.mxu3 }
 0x253   : > { %v1134_v21 = vmul.f32 %v1112_v18, %v543_v5  ;;  %v1226_v41 = vsel %vm1225_vm7, %v1178_v53, %v1224_v56 }
 0x255   : > { %v1179_v26 = vadd.f32 %v1134_v21, %v1133_v23 }
 0x257   : > { %v1180_v9 = vrot.slane %v1179_v26, 4 }
 0x259   : > { %v1181_v31 = vadd.f32 %v1180_v9, %v1179_v26 }
 0x25a   : > { %v1115_v29 = vpop.f32.mrf.mxu3 }
 0x25b   : > { %v1182_v15 = vrot.slane %v1181_v31, 2  ;;  %v1135_v37 = vmul.f32 %v1115_v29, %v546_v17 }
 0x25d   : > { %v1183_v25 = vadd.f32 %v1182_v15, %v1181_v31 }
 0x25f   : > { %v1184_v47 = vrot.slane %v1183_v25, 1 }
 0x261   : > { %v1185_v55 = vadd.f32 %v1184_v47, %v1183_v25 }
 0x262   : > { %v1118_v36 = vpop.f32.mrf.mxu3 }
 0x263   : > { %v1136_v39 = vmul.f32 %v1118_v36, %v549_v33  ;;  %v1228_v14 = vsel %vm1227_vm8, %v1185_v55, %v1226_v41 }
 0x265   : > { %v1186_v10 = vadd.f32 %v1136_v39, %v1135_v37 }
 0x267   : > { %v1187_v42 = vrot.slane %v1186_v10, 4 }
 0x269   : > { %v1188_v43 = vadd.f32 %v1187_v42, %v1186_v10 }
 0x26b   : > { %v1189_v48 = vrot.slane %v1188_v43, 2 }
 0x26d   : > { %v1190_v27 = vadd.f32 %v1189_v48, %v1188_v43 }
 0x26f   : > { %v1191_v46 = vrot.slane %v1190_v27, 1 }
 0x271   : > { %v1192_v22 = vadd.f32 %v1191_v46, %v1190_v27 }
 0x273   : > { %v1230_v57 = vsel %vm1229_vm9, %v1192_v22, %v1228_v14 }
 0x274   : > { %1248 = vmatmul.f32.vlgmr.msrb.gmra.mxu3 %v1230_v57 }
 0x2f7   : > { %v1249_v58 = vpop.f32.mrf.mxu3 }
 0x2f8   : > { %1252 = vst [vmem:[%s322_s19] sm:$0xff] %v1249_v58 }
 0x2f9   : > { %1594 = shalt.err (!%p1591_p9)
}
 0x2fa   : > { %1437 = dma.vmem_to_hbm [thread:$0]  (%p1717_p5), %s1267_s21, 128, %s1269_s22, %s1254_s13  }
 0x2fb PF: > { %p1449_p10 = scmp.ge.s32.totalorder %s1633_s27, 2  ;;  %s1280_s29 = sand.u32 1, %s1621_s24  }
 0x2fc   : > { %s1281_s14 = scalar_lea.sflag [#allocation4], %s1280_s29 }
 0x2fd   : > { %p1444_p11 = pnand %p1449_p10, %p1721_p6 }
 0x2ff   : > { %p1445_p12 = pneg %p1444_p11 }
 0x301   : > { %1616 = dma.done.wait (%p1445_p12), %s1281_s14, 128  }
 0x302   : > { %1618 = vsyncadd (%p1445_p12), %s1281_s14, 4294967168  ;;  %p18_p13 = scmp.ge.s32.totalorder %s1704_s30, 4   ;;  %s2131_s24 = smov %s1625_s25 }
 0x303   : > { %s2132_s25 = smov %s1629_s26  ;;  %s2133_s26 = smov %s1715_s10 }
 0x304   : > { %s2134_s27 = smov %s1704_s30  ;;  %20 = sbr.rel (!%p18_p13) target bundleno = 4 (0x4), region = 94 }
 0x309   :  { %1287 = vsyncpa [#allocation3], 1 }
 0x30a   :  { %1289 = vsyncpa [#allocation3 + $0x1], 1 }
 0x30b   :  { %1290 = vsyncpa [#allocation4], 1 }
 0x30c   :  { %1292 = vsyncpa [#allocation4 + $0x1], 1 }

</bundles_post_ra>
